<compile_context>
chip_gen: v6e
topology: v6e:2x2x1
jax: 0.10.0
libtpu: 0.0.40
codegen_flags: <defaults>
</compile_context>

<pallas_src>
import functools

import jax
import jax.numpy as jnp
from jax.experimental import pallas as pl
from jax.experimental.pallas import tpu as pltpu

BN_EPS = 1e-5


def _round_up(n, m):
    return ((n + m - 1) // m) * m


def _mlp_kernel(n_hidden, x_ref, *rest_refs):
    """Fused MLP forward for one batch tile.

    Param refs per hidden layer: [W, b] (BatchNorm already folded into W/b on the
    host), then final [W_out, b_out]; the output ref comes last. The per-tile
    output is written lane-dense as a (1, 1, tile_b) row block.
    """
    refs = list(rest_refs)
    o_ref = refs.pop()                      # output ref is last

    # Feed x in its stored dtype (f32 or bf16) straight to the MXU; accumulate in f32.
    h = x_ref[...]
    for l in range(n_hidden):
        w = refs[2 * l][...]                # (in, dim)
        b = refs[2 * l + 1][...]            # (1, dim)  (BN folded in)
        h = jnp.dot(h, w, preferred_element_type=jnp.float32) + b
        # Dropout (eval) = identity
        h = jnp.maximum(h, 0.0)             # ReLU, f32 on the VPU (safe on v5e)

    w_out = refs[2 * n_hidden][...]         # (hidden, 1)
    b_out = refs[2 * n_hidden + 1][...]     # (1, 1)
    logit = jnp.dot(h, w_out, preferred_element_type=jnp.float32) + b_out   # (tile_b, 1)
    # nn.Sigmoid layer + the extra torch.sigmoid in forward() (kept to match the spec).
    out = jax.nn.sigmoid(jax.nn.sigmoid(logit))
    # Lane-dense store: (tile_b, 1) column -> (1, tile_b) row (XLU transpose), add lead dim.
    o_ref[...] = out.T[None].astype(o_ref.dtype)


def fold_bn_params(params, layers_meta):
    """Fold eval-mode BatchNorm (running stats + affine) into the preceding Linear:
    s = gamma * rsqrt(var + eps);  W' = W * s;  b' = (b - mean) * s + beta."""
    folded = []
    idx = 0
    for has_bn in layers_meta:
        W, b = params[idx], params[idx + 1]
        idx += 2
        if has_bn:
            gamma, beta, rmean, rvar = params[idx:idx + 4]
            idx += 4
            s = gamma * jax.lax.rsqrt(rvar + BN_EPS)      # (1, dim)
            W = W * s
            b = (b - rmean) * s + beta
        folded += [W, b]
    folded += [params[idx], params[idx + 1]]              # final Linear(current, 1)
    return folded


def comp_claim_forward(x, params, layers_meta, *, tile_b=None):
    """x: [B, D_in] (float32 or bfloat16). params: raw parameter list from
    init_params (PyTorch-equivalent values); BN is folded here before the kernel.
    Ragged batches are zero-padded and sliced back."""
    B, D = x.shape
    if tile_b is None:
        # ~512-row tiles are the measured pipelining knee; round small batches
        # up to a lane-friendly multiple of 128.
        tile_b = min(512, _round_up(B, 128))

    flat = fold_bn_params(params, layers_meta)
    n_hidden = len(layers_meta)

    Bp = _round_up(B, tile_b)
    if Bp != B:
        x = jnp.pad(x, ((0, Bp - B), (0, 0)))
    num_tiles = Bp // tile_b

    # If profiling ever shows exposed x DMA, add pipeline_mode=pl.Buffered(3) here.
    x_spec = pl.BlockSpec((tile_b, D), lambda i: (i, 0))
    # Parameters are tiny: full-array blocks with a constant index_map
    # (resident across the batch-tile grid).
    param_specs = [pl.BlockSpec(p.shape, lambda i: (0, 0)) for p in flat]
    # Lane-dense output: (num_tiles, 1, tile_b); one (1, 1, tile_b) row per grid step.
    out_spec = pl.BlockSpec((1, 1, tile_b), lambda i: (i, 0, 0))

    kernel = functools.partial(_mlp_kernel, n_hidden)
    out = pl.pallas_call(
        kernel,
        out_shape=jax.ShapeDtypeStruct((num_tiles, 1, tile_b), jnp.float32),
        grid_spec=pltpu.PrefetchScalarGridSpec(
            num_scalar_prefetch=0,
            grid=(num_tiles,),
            in_specs=[x_spec] + param_specs,
            out_specs=out_spec,
        ),
        # VMEM use is tiny (2 x tile_b x D x 4B double-buffered input + small params),
        # well inside every generation's scoped default (incl. v7x's 32 MiB);
        # set vmem_limit_bytes explicitly only if D_in / tile_b grow a lot.
        compiler_params=pltpu.CompilerParams(
            dimension_semantics=("parallel",)),
    )(x, *flat)

    return out.reshape(Bp, 1)[:B]


def init_params(key, layers_config, input_data_dim):
    """Deterministic init mirroring the PyTorch module's parameter shapes.
    Linear W stored as [in, out]; biases / BN vectors stored as [1, dim]."""
    params = []
    layers_meta = []
    current = input_data_dim
    for layer in layers_config:
        dim = layer['dim']
        key, kw, kb = jax.random.split(key, 3)
        bound = 1.0 / jnp.sqrt(current)
        W = jax.random.uniform(kw, (current, dim), jnp.float32, -bound, bound)
        b = jax.random.uniform(kb, (1, dim), jnp.float32, -bound, bound)
        params += [W, b]
        if layer['batch_normal']:
            nf = layer['batch_normal_features']
            params += [jnp.ones((1, nf), jnp.float32),    # gamma
                       jnp.zeros((1, nf), jnp.float32),   # beta
                       jnp.zeros((1, nf), jnp.float32),   # running_mean
                       jnp.ones((1, nf), jnp.float32)]    # running_var
            layers_meta.append(True)
        else:
            layers_meta.append(False)
        current = dim
    key, kw, kb = jax.random.split(key, 3)
    bound = 1.0 / jnp.sqrt(current)
    W_out = jax.random.uniform(kw, (current, 1), jnp.float32, -bound, bound)
    b_out = jax.random.uniform(kb, (1, 1), jnp.float32, -bound, bound)
    params += [W_out, b_out]
    return params, tuple(layers_meta)


def reference_forward(x, params, layers_meta):
    """Pure-JAX reference using the UNfolded parameters (also validates BN folding)."""
    h = x.astype(jnp.float32)
    idx = 0
    for has_bn in layers_meta:
        W, b = params[idx], params[idx + 1]; idx += 2
        h = h @ W + b
        if has_bn:
            g, bt, rm, rv = params[idx:idx + 4]; idx += 4
            h = (h - rm) / jnp.sqrt(rv + BN_EPS) * g + bt
        h = jnp.maximum(h, 0.0)
    W, b = params[idx], params[idx + 1]
    return jax.nn.sigmoid(jax.nn.sigmoid(h @ W + b))


if __name__ == "__main__":
    layers_config = [
        {'dim': 32, 'batch_normal': True, 'batch_normal_features': 32,
         'drop_out_rate': 0.2},
        {'dim': 32, 'batch_normal': False, 'drop_out_rate': 0.1},
    ]
    input_data_dim = 64
    B = 250  # intentionally ragged to exercise the padding path

    key = jax.random.PRNGKey(0)
    key, kx = jax.random.split(key)
    x = jax.random.normal(kx, (B, input_data_dim), jnp.float32)

    params, layers_meta = init_params(key, layers_config, input_data_dim)
    ref = reference_forward(x, params, layers_meta)

    # Explicit tile size (two grid steps -> both v7x TensorCores get work).
    out = comp_claim_forward(x, params, layers_meta, tile_b=128)
    out = jax.block_until_ready(out)
    assert out.shape == (B, 1)
    assert jnp.allclose(out, ref, atol=2e-5, rtol=2e-5), "mismatch vs reference (tile_b=128)"

    # Default tile size path (single full tile at this small batch).
    out2 = jax.block_until_ready(comp_claim_forward(x, params, layers_meta))
    assert out2.shape == (B, 1)
    assert jnp.allclose(out2, ref, atol=2e-5, rtol=2e-5), "mismatch vs reference (default tile)"

    print("KERNEL_OK")
</pallas_src>

<mosaic_0001>
module attributes {stable_mosaic.version = 11 : i64} {
  func.func @_mlp_kernel(%arg0: i32, %arg1: memref<128x64xf32, #tpu.memory_space<vmem>>, %arg2: memref<64x32xf32, #tpu.memory_space<vmem>>, %arg3: memref<1x32xf32, #tpu.memory_space<vmem>>, %arg4: memref<32x32xf32, #tpu.memory_space<vmem>>, %arg5: memref<1x32xf32, #tpu.memory_space<vmem>>, %arg6: memref<32x1xf32, #tpu.memory_space<vmem>>, %arg7: memref<1x1xf32, #tpu.memory_space<vmem>>, %arg8: memref<1x1x128xf32, #tpu.memory_space<vmem>>) attributes {dimension_semantics = [#tpu.dimension_semantics<parallel>], iteration_bounds = array<i64: 2>, scalar_prefetch = 0 : i64, scratch_operands = 0 : i64, tpu.core_type = #tpu.core_type<tc>, window_params = [{transform_indices = @transform_0, window_bounds = array<i64: 128, 64>}, {pipeline_mode = #tpu.pipeline_mode<synchronous>, transform_indices = @transform_1, window_bounds = array<i64: 64, 32>}, {pipeline_mode = #tpu.pipeline_mode<synchronous>, transform_indices = @transform_2, window_bounds = array<i64: 1, 32>}, {pipeline_mode = #tpu.pipeline_mode<synchronous>, transform_indices = @transform_3, window_bounds = array<i64: 32, 32>}, {pipeline_mode = #tpu.pipeline_mode<synchronous>, transform_indices = @transform_4, window_bounds = array<i64: 1, 32>}, {pipeline_mode = #tpu.pipeline_mode<synchronous>, transform_indices = @transform_5, window_bounds = array<i64: 32, 1>}, {pipeline_mode = #tpu.pipeline_mode<synchronous>, transform_indices = @transform_6, window_bounds = array<i64: 1, 1>}, {transform_indices = @transform_7, window_bounds = array<i64: 1, 1, 128>}]} {
    %c0 = arith.constant 0 : index
    %c0_0 = arith.constant 0 : index
    %0 = vector.load %arg1[%c0, %c0_0] : memref<128x64xf32, #tpu.memory_space<vmem>>, vector<128x64xf32>
    %c0_1 = arith.constant 0 : index
    %c0_2 = arith.constant 0 : index
    %1 = vector.load %arg2[%c0_1, %c0_2] : memref<64x32xf32, #tpu.memory_space<vmem>>, vector<64x32xf32>
    %c0_3 = arith.constant 0 : index
    %c0_4 = arith.constant 0 : index
    %2 = vector.load %arg3[%c0_3, %c0_4] : memref<1x32xf32, #tpu.memory_space<vmem>>, vector<1x32xf32>
    %cst = arith.constant dense<0.000000e+00> : vector<128x32xf32>
    %3 = tpu.matmul %0, %1, %cst {dimension_numbers = #tpu.dot_dimension_numbers<[1], [0], [0], [1], [0, 0, 1, 1], [], []>} : vector<128x64xf32>, vector<64x32xf32>, vector<128x32xf32> -> vector<128x32xf32>
    %4 = vector.broadcast %2 : vector<1x32xf32> to vector<128x32xf32>
    %5 = arith.addf %3, %4 : vector<128x32xf32>
    %cst_5 = arith.constant 0.000000e+00 : f32
    %6 = vector.broadcast %cst_5 : f32 to vector<128x32xf32>
    %7 = arith.maximumf %5, %6 : vector<128x32xf32>
    %c0_6 = arith.constant 0 : index
    %c0_7 = arith.constant 0 : index
    %8 = vector.load %arg4[%c0_6, %c0_7] : memref<32x32xf32, #tpu.memory_space<vmem>>, vector<32x32xf32>
    %c0_8 = arith.constant 0 : index
    %c0_9 = arith.constant 0 : index
    %9 = vector.load %arg5[%c0_8, %c0_9] : memref<1x32xf32, #tpu.memory_space<vmem>>, vector<1x32xf32>
    %cst_10 = arith.constant dense<0.000000e+00> : vector<128x32xf32>
    %10 = tpu.matmul %7, %8, %cst_10 {dimension_numbers = #tpu.dot_dimension_numbers<[1], [0], [0], [1], [0, 0, 1, 1], [], []>} : vector<128x32xf32>, vector<32x32xf32>, vector<128x32xf32> -> vector<128x32xf32>
    %11 = vector.broadcast %9 : vector<1x32xf32> to vector<128x32xf32>
    %12 = arith.addf %10, %11 : vector<128x32xf32>
    %cst_11 = arith.constant 0.000000e+00 : f32
    %13 = vector.broadcast %cst_11 : f32 to vector<128x32xf32>
    %14 = arith.maximumf %12, %13 : vector<128x32xf32>
    %c0_12 = arith.constant 0 : index
    %c0_13 = arith.constant 0 : index
    %15 = vector.load %arg6[%c0_12, %c0_13] : memref<32x1xf32, #tpu.memory_space<vmem>>, vector<32x1xf32>
    %c0_14 = arith.constant 0 : index
    %c0_15 = arith.constant 0 : index
    %16 = vector.load %arg7[%c0_14, %c0_15] : memref<1x1xf32, #tpu.memory_space<vmem>>, vector<1x1xf32>
    %cst_16 = arith.constant dense<0.000000e+00> : vector<128x1xf32>
    %17 = tpu.matmul %14, %15, %cst_16 {dimension_numbers = #tpu.dot_dimension_numbers<[1], [0], [0], [1], [0, 0, 1, 1], [], []>} : vector<128x32xf32>, vector<32x1xf32>, vector<128x1xf32> -> vector<128x1xf32>
    %18 = vector.broadcast %16 : vector<1x1xf32> to vector<128x1xf32>
    %19 = arith.addf %17, %18 : vector<128x1xf32>
    %20 = arith.negf %19 : vector<128x1xf32>
    %21 = math.exp %20 : vector<128x1xf32>
    %cst_17 = arith.constant 1.000000e+00 : f32
    %22 = vector.broadcast %cst_17 : f32 to vector<128x1xf32>
    %23 = arith.addf %22, %21 : vector<128x1xf32>
    %24 = arith.divf %22, %23 : vector<128x1xf32>
    %25 = arith.negf %24 : vector<128x1xf32>
    %26 = math.exp %25 : vector<128x1xf32>
    %cst_18 = arith.constant 1.000000e+00 : f32
    %27 = vector.broadcast %cst_18 : f32 to vector<128x1xf32>
    %28 = arith.addf %27, %26 : vector<128x1xf32>
    %29 = arith.divf %27, %28 : vector<128x1xf32>
    %30 = tpu.transpose %29, [1, 0] : vector<128x1xf32> -> vector<1x128xf32>
    %31 = vector.shape_cast %30 : vector<1x128xf32> to vector<1x1x128xf32>
    %c0_19 = arith.constant 0 : index
    %c0_20 = arith.constant 0 : index
    %c0_21 = arith.constant 0 : index
    %32 = vector.load %arg8[%c0_19, %c0_20, %c0_21] : memref<1x1x128xf32, #tpu.memory_space<vmem>>, vector<1x1x128xf32>
    tpu.vector_store %arg8[%c0_19, %c0_20, %c0_21], %31 {strides = array<i32>} : memref<1x1x128xf32, #tpu.memory_space<vmem>>, vector<1x1x128xf32>,
    return
  }
  func.func @transform_0(%arg0: i32) -> (i32, i32) {
    %c0_i32 = arith.constant 0 : i32
    %c0_i32_0 = arith.constant 0 : i32
    return %arg0, %c0_i32 : i32, i32
  }
  func.func @transform_1(%arg0: i32) -> (i32, i32) {
    %c0_i32 = arith.constant 0 : i32
    %c0_i32_0 = arith.constant 0 : i32
    %c0_i32_1 = arith.constant 0 : i32
    return %c0_i32, %c0_i32_0 : i32, i32
  }
  func.func @transform_2(%arg0: i32) -> (i32, i32) {
    %c0_i32 = arith.constant 0 : i32
    %c0_i32_0 = arith.constant 0 : i32
    %c0_i32_1 = arith.constant 0 : i32
    return %c0_i32, %c0_i32_0 : i32, i32
  }
  func.func @transform_3(%arg0: i32) -> (i32, i32) {
    %c0_i32 = arith.constant 0 : i32
    %c0_i32_0 = arith.constant 0 : i32
    %c0_i32_1 = arith.constant 0 : i32
    return %c0_i32, %c0_i32_0 : i32, i32
  }
  func.func @transform_4(%arg0: i32) -> (i32, i32) {
    %c0_i32 = arith.constant 0 : i32
    %c0_i32_0 = arith.constant 0 : i32
    %c0_i32_1 = arith.constant 0 : i32
    return %c0_i32, %c0_i32_0 : i32, i32
  }
  func.func @transform_5(%arg0: i32) -> (i32, i32) {
    %c0_i32 = arith.constant 0 : i32
    %c0_i32_0 = arith.constant 0 : i32
    %c0_i32_1 = arith.constant 0 : i32
    return %c0_i32, %c0_i32_0 : i32, i32
  }
  func.func @transform_6(%arg0: i32) -> (i32, i32) {
    %c0_i32 = arith.constant 0 : i32
    %c0_i32_0 = arith.constant 0 : i32
    %c0_i32_1 = arith.constant 0 : i32
    return %c0_i32, %c0_i32_0 : i32, i32
  }
  func.func @transform_7(%arg0: i32) -> (i32, i32, i32) {
    %c0_i32 = arith.constant 0 : i32
    %c0_i32_0 = arith.constant 0 : i32
    %c0_i32_1 = arith.constant 0 : i32
    return %arg0, %c0_i32, %c0_i32_0 : i32, i32, i32
  }
}

</mosaic_0001>

<bundles_post_ra>
// kernel: tpu_custom_call.1
= control target key start
LH: loop header
LB: loop body
LE: loop exit
PB: predicated region body
PF: predicated region fallthrough
CT: control target
= control target key end

     0   :  { %s2028_s0 = inlined_call_operand.vmem [shape: f32[256,64], index: 0, kind: input, shape index: {}]   ;;  %s2029_s1 = inlined_call_operand.vmem [shape: f32[64,32], index: 1, kind: input, shape index: {}]   ;;  %s2030_s2 = inlined_call_operand.vmem [shape: f32[1,32], index: 2, kind: input, shape index: {}]   ;;  %s2031_s3 = inlined_call_operand.vmem [shape: f32[32,32], index: 3, kind: input, shape index: {}]   ;;  %s2032_s4 = inlined_call_operand.vmem [shape: f32[1,32], index: 4, kind: input, shape index: {}]   ;;  %s2033_s5 = inlined_call_operand.vmem [shape: f32[32,1], index: 5, kind: input, shape index: {}]   ;;  %s2034_s6 = inlined_call_operand.<no memory space> [shape: f32[1,1], index: 6, kind: input, shape index: {}]   ;;  %s2035_s7 = inlined_call_operand.hbm [shape: f32[2,1,128], index: 7, kind: output, shape index: {}]  }
   0x1   :  { %v12_v0 = vstv %s2034_s6 }
   0x2   :  { %13 = vst [vmem:[#allocation2] sm:$0x1] %v12_v0 }
   0x3   :  { %14 = vsyncpa [#allocation4], 0 }
   0x4   :  { %16 = vsyncpa [#allocation4 + $0x1], 0  ;;  %s1780_s26 = smov 0   ;;  %s1782_s27 = smov 0  }
   0x5   :  { %s1784_s28 = smov 0   ;;  %s1786_s29 = smov 0  }
   0x6 LB: > { %s1238_s6 = sadd.s32 4294967295, %s1734_s29   ;;  %s1239_s30 = sadd.s32 4294967294, %s1734_s29   ;;  %s1734_s29 = sphi %s1786_s29, %s2041_s29   ;;  %s1730_s28 = sphi %s1784_s28, %s2040_s28   ;;  %s1726_s27 = sphi %s1782_s27, %s2039_s27   ;;  %s1722_s26 = sphi %s1780_s26, %s2038_s26  }
   0x7   : > { %s1803_s8 = sadd.s32 1, %s1734_s29   ;;  %s181_s9 = sadd.s32 1, %s1730_s28 }
   0x8   : > { %s178_s10 = ssub.s32 %s1734_s29, %s1803_s8  ;;  %p191_p0 = scmp.ne.s32.totalorder %s1730_s28, %s1726_s27 }
   0x9   : > { %p179_p1 = scmp.eq.s32.totalorder %s178_s10, 0  ;;  %p192_p2 = scmp.eq.s32.totalorder %s1238_s6, 1 }
   0xa   : > { %p197_p3 = scmp.ne.s32.totalorder %s1726_s27, %s1722_s26  ;;  %p198_p4 = scmp.eq.s32.totalorder %s1239_s30, 1 }
   0xb   : > { %s1813_s11 = scalar_select %p179_p1, %s1730_s28, %s181_s9  }
   0xc   : > { %p1815_p5 = por %p192_p2, %p191_p0  ;;  %p1819_p6 = por %p198_p4, %p197_p3 }
   0xd   : > { %p1242_p7 = scmp.ge.s32.totalorder %s1734_s29, 1  ;;  %p243_p8 = scmp.lt.s32.totalorder %s1734_s29, 3 }
   0xf   : > { %p244_p9 = pnand %p1242_p7, %p243_p8 }
  0x10   : > { %s1831_s18 = sshll.u32 (!%p244_p9), %s1238_s6, 4  ;;  %s272_s6 = sand.u32 (!%p244_p9), 1, %s1726_s27  }
  0x11   : > { %247 = sbr.rel (%p244_p9) target bundleno = 838 (0x346), region = 48  ;;  %p275_p10 = scmp.lt.s32.totalorder (!%p244_p9), %s1831_s18, 31 }
  0x12   : > { %s273_s30 = scalar_lea.vmem (!%p244_p9), [#allocation3], %s272_s6  ;;  %s1182_s15 = scalar_lea.hbm (!%p244_p9), %s2035_s7, %s1831_s18 }
  0x13   : > { %s1172_s16 = scalar_lea.sflag (!%p244_p9), [#allocation4], %s272_s6  ;;  %s1736_s19 = smov (!%p244_p9), [#allocation3]  }
  0x14   : > { %s1678_s20 = sshll.u32 (!%p244_p9), %s1736_s19, 4  ;;  %s1679_s20 = int_to_ptr.vmem [resolvable:$false] %s1678_s20 }
  0x15   : > { %s1680_s21 = scalar_lea.vmem (!%p244_p9), %s1679_s20, 32 }
  0x16   : > { %v303_v1 = vld [vmem:[%s2029_s1 + $0x38] sm:$0xff]  ;;  %v302_v2 = vld [vmem:[%s2029_s1 + $0x30] sm:$0xff]  ;;  %v301_v3 = vld [vmem:[%s2029_s1 + $0x28] sm:$0xff]  ;;  %s276_s23 = scalar_select %p275_p10, %s1831_s18, 31  ;;  %vm311_vm0 = vcmask 523264   ;;  %vm532_vm1 = vcmask 261120  }
  0x17   : > { %1395 = vmatprep.subr.mxu0 %v303_v1  ;;  %v524_v4 = vld [vmem:[%s2031_s3 + $0x18] sm:$0xff]  ;;  %v300_v5 = vld [vmem:[%s2029_s1 + $0x20] sm:$0xff]  ;;  %v523_v6 = vld [vmem:[%s2031_s3 + $0x10] sm:$0xff] }
  0x18   : > { %1396 = vmatpush3.msra.mxu0 %v303_v1  ;;  %1499 = vmatprep.subr.mxu1 %v524_v4  ;;  %s1244_s9 = sshll.u32 %s276_s23, 3  ;;  %v299_v7 = vld [vmem:[%s2029_s1 + $0x18] sm:$0xff]  ;;  %v522_v8 = vld [vmem:[%s2031_s3 + $0x8] sm:$0xff]  ;;  %v298_v10 = vld [vmem:[%s2029_s1 + $0x10] sm:$0xff] }
  0x19   : > { %1397 = vmatprep.subr.mxu0 %v302_v2  ;;  %1503 = vmatpush3.msra.mxu1 %v524_v4  ;;  %s1853_s17 = scalar_lea.vmem %s2028_s0, %s1244_s9  ;;  %v521_v11 = vld [vmem:[%s2031_s3] sm:$0xff]  ;;  %v297_v12 = vld [vmem:[%s2029_s1 + $0x8] sm:$0xff]  ;;  %v745_v29 = vld [vmem:[%s2033_s5 + $0x18] sm:$0xff]  ;;  %s1184_s9 = sshll.u32 %s273_s30, 4  ;;  %s1989_s9 = int_to_ptr.vmem [resolvable:$true] %s1184_s9 }
  0x1a   : > { %1398 = vmatpush3.msra.mxu0 %v302_v2  ;;  %1500 = vmatprep.subr.mxu1 %v523_v6  ;;  %v280_v9 = vld [vmem:[%s1853_s17] sm:$0xff]  ;;  %v281_v14 = vld [vmem:[%s1853_s17 + $0x8] sm:$0xff]  ;;  %v282_v15 = vld [vmem:[%s1853_s17 + $0x10] sm:$0xff]  ;;  %p1681_p0 = scmp.lt.s32.totalorder %s1989_s9, %s1679_s20 }
  0x1b   : > { %1399 = vmatprep.subr.mxu0 %v301_v3  ;;  %1504 = vmatpush3.msra.mxu1 %v523_v6  ;;  %v296_v13 = vld [vmem:[%s2029_s1] sm:$0xff]  ;;  %v283_v16 = vld [vmem:[%s1853_s17 + $0x18] sm:$0xff]  ;;  %v285_v18 = vld [vmem:[%s1853_s17 + $0x28] sm:$0xff] }
  0x1c   : > { %1400 = vmatpush3.msra.mxu0 %v301_v3  ;;  %1501 = vmatprep.subr.mxu1 %v522_v8  ;;  %v284_v17 = vld [vmem:[%s1853_s17 + $0x20] sm:$0xff]  ;;  %v286_v19 = vld [vmem:[%s1853_s17 + $0x30] sm:$0xff]  ;;  %v287_v20 = vld [vmem:[%s1853_s17 + $0x38] sm:$0xff] }
  0x1d   : > { %1401 = vmatprep.subr.mxu0 %v300_v5  ;;  %1411 = vmatprep.mubr.msk.f32.mxu0 %vm311_vm0, %v280_v9  ;;  %v288_v21 = vld [vmem:[%s1853_s17 + $0x40] sm:$0xff]  ;;  %v289_v22 = vld [vmem:[%s1853_s17 + $0x48] sm:$0xff]  ;;  %v290_v23 = vld [vmem:[%s1853_s17 + $0x50] sm:$0xff] }
  0x1e   : > { %1402 = vmatpush3.msra.mxu0 %v300_v5  ;;  %1505 = vmatpush3.msra.mxu1 %v522_v8  ;;  %v291_v24 = vld [vmem:[%s1853_s17 + $0x58] sm:$0xff]  ;;  %v292_v25 = vld [vmem:[%s1853_s17 + $0x60] sm:$0xff]  ;;  %v293_v26 = vld [vmem:[%s1853_s17 + $0x68] sm:$0xff] }
  0x1f   : > { %1403 = vmatprep.subr.mxu0 %v299_v7  ;;  %1502 = vmatprep.subr.mxu1 %v521_v11  ;;  %v294_v27 = vld [vmem:[%s1853_s17 + $0x70] sm:$0xff]  ;;  %v295_v28 = vld [vmem:[%s1853_s17 + $0x78] sm:$0xff]  ;;  %v1908_v30 = vld [vmem:[%s2030_s2] ss:$0 sm:$0xff]  ;;  %s1674_s17 = scalar_lea.vmem %s1989_s9, 16 }
  0x20   : > { %1404 = vmatpush3.msra.mxu0 %v299_v7  ;;  %1506 = vmatpush3.msra.mxu1 %v521_v11  ;;  %v744_v59 = vld [vmem:[%s2033_s5 + $0x10] sm:$0xff]  ;;  %v743_v0 = vld [vmem:[%s2033_s5 + $0x8] sm:$0xff]  ;;  %p1675_p11 = scmp.ne.s32.totalorder %s1989_s9, %s1674_s17  ;;  %p1682_p1 = scmp.lt.s32.totalorder %s1680_s21, %s1674_s17 }
  0x21   : > { %1405 = vmatprep.subr.mxu0 %v298_v10  ;;  %1467 = vmatprep.subr.mxu1 %v745_v29 }
  0x22   : > { %1406 = vmatpush3.msra.mxu0 %v298_v10  ;;  %p1676_p12 = pnand %p1675_p11, %p1815_p5  ;;  %p1683_p2 = por %p1682_p1, %p1681_p0 }
  0x23   : > { %1407 = vmatprep.subr.mxu0 %v297_v12 }
  0x24   : > { %1408 = vmatpush3.msra.mxu0 %v297_v12  ;;  %p1677_p13 = pneg %p1676_p12 }
  0x25   : > { %1409 = vmatprep.subr.mxu0 %v296_v13 }
  0x26   : > { %1410 = vmatpush3.msra.mxu0 %v296_v13  ;;  %p1684_p3 = pnand %p1683_p2, %p1677_p13 }
  0x27   : > { %1412 = vmatmul.mubr.msk.f32.vlgmr.msra.gmra.mxu0 %vm311_vm0, %v281_v14  ;;  %1435 = vmatprep.subr.mxu0 %v524_v4 }
  0x28   : > { %1414 = vmatprep.mubr.msk.f32.mxu0 %vm311_vm0, %v282_v15  ;;  %1436 = vmatpush3.msra.mxu0 %v524_v4 }
  0x29   : > { %1437 = vmatprep.subr.mxu0 %v523_v6 }
  0x2a   : > { %1438 = vmatpush3.msra.mxu0 %v523_v6 }
  0x2b   : > { %1415 = vmatmul.mubr.msk.f32.gmra.mxu0 %vm311_vm0, %v283_v16  ;;  %1439 = vmatprep.subr.mxu0 %v522_v8 }
  0x2c   : > { %1417 = vmatprep.mubr.msk.f32.mxu0 %vm311_vm0, %v284_v17  ;;  %1440 = vmatpush3.msra.mxu0 %v522_v8  ;;  %v742_v17 = vld [vmem:[%s2033_s5] sm:$0xff] }
  0x2d   : > { %1441 = vmatprep.subr.mxu0 %v521_v11 }
  0x2e   : > { %1442 = vmatpush3.msra.mxu0 %v521_v11 }
  0x2f   : > { %1418 = vmatmul.mubr.msk.f32.gmra.mxu0 %vm311_vm0, %v285_v18  ;;  %v1262_v18 = vld [vmem:[%s2032_s4] ss:$0 sm:$0xff] }
  0x30   : > { %1420 = vmatprep.mubr.msk.f32.mxu0 %vm311_vm0, %v286_v19 }
  0x33   : > { %1421 = vmatmul.mubr.msk.f32.gmra.mxu0 %vm311_vm0, %v287_v20 }
  0x34   : > { %1423 = vmatprep.mubr.msk.f32.mxu0 %vm311_vm0, %v288_v21 }
  0x37   : > { %1424 = vmatmul.mubr.msk.f32.gmra.mxu0 %vm311_vm0, %v289_v22 }
  0x38   : > { %1426 = vmatprep.mubr.msk.f32.mxu0 %vm311_vm0, %v290_v23 }
  0x3b   : > { %1427 = vmatmul.mubr.msk.f32.gmra.mxu0 %vm311_vm0, %v291_v24 }
  0x3c   : > { %1429 = vmatprep.mubr.msk.f32.mxu0 %vm311_vm0, %v292_v25 }
  0x3f   : > { %1430 = vmatmul.mubr.msk.f32.gmra.mxu0 %vm311_vm0, %v293_v26 }
  0x40   : > { %1432 = vmatprep.mubr.msk.f32.mxu0 %vm311_vm0, %v294_v27 }
  0x43   : > { %1433 = vmatmul.mubr.msk.f32.gmra.mxu0 %vm311_vm0, %v295_v28 }
  0xe7   : > { %v1413_v31 = vpop.f32.mrf.mxu0 }
  0xe8   : > { %v432_v32 = vadd.f32 %v1413_v31, %v1908_v30 }
  0xe9   : > { %v426_v33 = vpop.f32.mrf.mxu0 }
  0xea   : > { %v427_v34 = vadd.f32 %v1908_v30, %v426_v33  ;;  %v506_v38 = vmax.f32 %v432_v32, 0.0 }
  0xeb   : > { %v1416_v35 = vpop.f32.mrf.mxu0 }
  0xec   : > { %v505_v36 = vmax.f32 %v427_v34, 0.0  ;;  %v442_v37 = vadd.f32 %v1416_v35, %v1908_v30 }
  0xed   : > { %v436_v39 = vpop.f32.mrf.mxu0 }
  0xee   : > { %v437_v40 = vadd.f32 %v1908_v30, %v436_v39  ;;  %1443 = vmatprep.mubr.msk.f32.mxu0 %vm532_vm1, %v505_v36  ;;  %v508_v41 = vmax.f32 %v442_v37, 0.0 }
  0xef   : > { %v1419_v42 = vpop.f32.mrf.mxu0  ;;  %1444 = vmatmul.mubr.msk.f32.vlgmr.msra.gmra.mxu0 %vm532_vm1, %v506_v38 }
  0xf0   : > { %v507_v43 = vmax.f32 %v437_v40, 0.0  ;;  %v452_v44 = vadd.f32 %v1419_v42, %v1908_v30 }
  0xf1   : > { %v446_v45 = vpop.f32.mrf.mxu0 }
  0xf2   : > { %v447_v46 = vadd.f32 %v1908_v30, %v446_v45  ;;  %1446 = vmatprep.mubr.msk.f32.mxu0 %vm532_vm1, %v507_v43  ;;  %v510_v47 = vmax.f32 %v452_v44, 0.0 }
  0xf3   : > { %1447 = vmatmul.mubr.msk.f32.gmra.mxu0 %vm532_vm1, %v508_v41  ;;  %v1422_v48 = vpop.f32.mrf.mxu0 }
  0xf4   : > { %v509_v49 = vmax.f32 %v447_v46, 0.0  ;;  %v462_v50 = vadd.f32 %v1422_v48, %v1908_v30 }
  0xf5   : > { %v456_v51 = vpop.f32.mrf.mxu0 }
  0xf6   : > { %1449 = vmatprep.mubr.msk.f32.mxu0 %vm532_vm1, %v509_v49  ;;  %v457_v52 = vadd.f32 %v1908_v30, %v456_v51  ;;  %v512_v53 = vmax.f32 %v462_v50, 0.0 }
  0xf7   : > { %1450 = vmatmul.mubr.msk.f32.gmra.mxu0 %vm532_vm1, %v510_v47  ;;  %v1425_v54 = vpop.f32.mrf.mxu0 }
  0xf8   : > { %v511_v55 = vmax.f32 %v457_v52, 0.0  ;;  %v472_v56 = vadd.f32 %v1425_v54, %v1908_v30 }
  0xf9   : > { %v466_v57 = vpop.f32.mrf.mxu0 }
  0xfa   : > { %1452 = vmatprep.mubr.msk.f32.mxu1 %vm532_vm1, %v511_v55  ;;  %v467_v58 = vadd.f32 %v1908_v30, %v466_v57  ;;  %v514_v60 = vmax.f32 %v472_v56, 0.0 }
  0xfb   : > { %1453 = vmatmul.mubr.msk.f32.vlgmr.msra.gmra.mxu1 %vm532_vm1, %v512_v53  ;;  %v1428_v61 = vpop.f32.mrf.mxu0 }
  0xfc   : > { %v513_v62 = vmax.f32 %v467_v58, 0.0  ;;  %v482_v63 = vadd.f32 %v1428_v61, %v1908_v30  ;;  %1468 = vmatpush3.msra.mxu1 %v745_v29 }
  0xfd   : > { %v476_v1 = vpop.f32.mrf.mxu0  ;;  %1469 = vmatprep.subr.mxu1 %v744_v59 }
  0xfe   : > { %1455 = vmatprep.mubr.msk.f32.mxu1 %vm532_vm1, %v513_v62  ;;  %v477_v2 = vadd.f32 %v1908_v30, %v476_v1  ;;  %1470 = vmatpush3.msra.mxu1 %v744_v59  ;;  %v516_v3 = vmax.f32 %v482_v63, 0.0 }
  0xff   : > { %1456 = vmatmul.mubr.msk.f32.gmra.mxu1 %vm532_vm1, %v514_v60  ;;  %v1431_v4 = vpop.f32.mrf.mxu0  ;;  %1471 = vmatprep.subr.mxu1 %v743_v0 }
 0x100   : > { %v515_v5 = vmax.f32 %v477_v2, 0.0  ;;  %v492_v6 = vadd.f32 %v1431_v4, %v1908_v30  ;;  %1472 = vmatpush3.msra.mxu1 %v743_v0 }
 0x101   : > { %v486_v7 = vpop.f32.mrf.mxu0  ;;  %1473 = vmatprep.subr.mxu1 %v742_v17 }
 0x102   : > { %1458 = vmatprep.mubr.msk.f32.mxu1 %vm532_vm1, %v515_v5  ;;  %v487_v8 = vadd.f32 %v1908_v30, %v486_v7  ;;  %v518_v9 = vmax.f32 %v492_v6, 0.0  ;;  %1474 = vmatpush3.msra.mxu1 %v742_v17 }
 0x103   : > { %1459 = vmatmul.mubr.msk.f32.gmra.mxu1 %vm532_vm1, %v516_v3  ;;  %v1434_v10 = vpop.f32.mrf.mxu0  ;;  %v1970_v3 = vld [vmem:[#allocation2] ss:$0 sm:$0xff] }
 0x104   : > { %v517_v11 = vmax.f32 %v487_v8, 0.0  ;;  %v502_v12 = vadd.f32 %v1434_v10, %v1908_v30 }
 0x105   : > { %v496_v13 = vpop.f32.mrf.mxu0 }
 0x106   : > { %1461 = vmatprep.mubr.msk.f32.mxu1 %vm532_vm1, %v517_v11  ;;  %v497_v14 = vadd.f32 %v1908_v30, %v496_v13  ;;  %v520_v15 = vmax.f32 %v502_v12, 0.0 }
 0x107   : > { %1462 = vmatmul.mubr.msk.f32.gmra.mxu1 %vm532_vm1, %v518_v9 }
 0x108   : > { %v519_v16 = vmax.f32 %v497_v14, 0.0 }
 0x10a   : > { %1464 = vmatprep.mubr.msk.f32.mxu1 %vm532_vm1, %v519_v16 }
 0x10b   : > { %1465 = vmatmul.mubr.msk.f32.gmra.mxu1 %vm532_vm1, %v520_v15 }
 0x1af   : > { %v1445_v19 = vpop.f32.mrf.mxu0 }
 0x1b0   : > { %v653_v20 = vadd.f32 %v1445_v19, %v1262_v18 }
 0x1b1   : > { %v647_v21 = vpop.f32.mrf.mxu0 }
 0x1b2   : > { %v648_v22 = vadd.f32 %v1262_v18, %v647_v21  ;;  %v727_v25 = vmax.f32 %v653_v20, 0.0 }
 0x1b3   : > { %v1448_v23 = vpop.f32.mrf.mxu0 }
 0x1b4   : > { %v726_v24 = vmax.f32 %v648_v22, 0.0  ;;  %v663_v26 = vadd.f32 %v1448_v23, %v1262_v18 }
 0x1b5   : > { %v657_v27 = vpop.f32.mrf.mxu0 }
 0x1b6   : > { %v658_v28 = vadd.f32 %v1262_v18, %v657_v27  ;;  %1475 = vmatprep.mubr.msk.f32.mxu1 %vm532_vm1, %v726_v24  ;;  %v729_v32 = vmax.f32 %v663_v26, 0.0 }
 0x1b7   : > { %v1451_v29 = vpop.f32.mrf.mxu0  ;;  %1476 = vmatmul.mubr.msk.f32.vlgmr.msra.gmra.mxu1 %vm532_vm1, %v727_v25 }
 0x1b8   : > { %v728_v30 = vmax.f32 %v658_v28, 0.0  ;;  %v673_v31 = vadd.f32 %v1451_v29, %v1262_v18 }
 0x1b9   : > { %v667_v33 = vpop.f32.mrf.mxu0 }
 0x1ba   : > { %v668_v34 = vadd.f32 %v1262_v18, %v667_v33  ;;  %1478 = vmatprep.mubr.msk.f32.mxu1 %vm532_vm1, %v728_v30  ;;  %v731_v35 = vmax.f32 %v673_v31, 0.0 }
 0x1bb   : > { %1479 = vmatmul.mubr.msk.f32.gmra.mxu1 %vm532_vm1, %v729_v32  ;;  %v1454_v36 = vpop.f32.mrf.mxu1 }
 0x1bc   : > { %v730_v37 = vmax.f32 %v668_v34, 0.0  ;;  %v683_v38 = vadd.f32 %v1454_v36, %v1262_v18 }
 0x1bd   : > { %v677_v39 = vpop.f32.mrf.mxu1 }
 0x1be   : > { %1481 = vmatprep.mubr.msk.f32.mxu1 %vm532_vm1, %v730_v37  ;;  %v678_v40 = vadd.f32 %v1262_v18, %v677_v39  ;;  %v733_v41 = vmax.f32 %v683_v38, 0.0 }
 0x1bf   : > { %1482 = vmatmul.mubr.msk.f32.gmra.mxu1 %vm532_vm1, %v731_v35  ;;  %v1457_v42 = vpop.f32.mrf.mxu1 }
 0x1c0   : > { %v732_v43 = vmax.f32 %v678_v40, 0.0  ;;  %v693_v44 = vadd.f32 %v1457_v42, %v1262_v18 }
 0x1c1   : > { %v687_v45 = vpop.f32.mrf.mxu1 }
 0x1c2   : > { %1484 = vmatprep.mubr.msk.f32.mxu1 %vm532_vm1, %v732_v43  ;;  %v688_v46 = vadd.f32 %v1262_v18, %v687_v45  ;;  %v735_v47 = vmax.f32 %v693_v44, 0.0 }
 0x1c3   : > { %1485 = vmatmul.mubr.msk.f32.gmra.mxu1 %vm532_vm1, %v733_v41  ;;  %v1460_v48 = vpop.f32.mrf.mxu1 }
 0x1c4   : > { %v734_v49 = vmax.f32 %v688_v46, 0.0  ;;  %v703_v50 = vadd.f32 %v1460_v48, %v1262_v18 }
 0x1c5   : > { %v697_v51 = vpop.f32.mrf.mxu1 }
 0x1c6   : > { %1487 = vmatprep.mubr.msk.f32.mxu1 %vm532_vm1, %v734_v49  ;;  %v698_v52 = vadd.f32 %v1262_v18, %v697_v51  ;;  %v737_v53 = vmax.f32 %v703_v50, 0.0 }
 0x1c7   : > { %1488 = vmatmul.mubr.msk.f32.gmra.mxu1 %vm532_vm1, %v735_v47  ;;  %v1463_v54 = vpop.f32.mrf.mxu1 }
 0x1c8   : > { %v736_v55 = vmax.f32 %v698_v52, 0.0  ;;  %v713_v56 = vadd.f32 %v1463_v54, %v1262_v18 }
 0x1c9   : > { %v707_v57 = vpop.f32.mrf.mxu1 }
 0x1ca   : > { %1490 = vmatprep.mubr.msk.f32.mxu1 %vm532_vm1, %v736_v55  ;;  %v708_v58 = vadd.f32 %v1262_v18, %v707_v57  ;;  %v739_v59 = vmax.f32 %v713_v56, 0.0 }
 0x1cb   : > { %1491 = vmatmul.mubr.msk.f32.gmra.mxu1 %vm532_vm1, %v737_v53  ;;  %v1466_v60 = vpop.f32.mrf.mxu1 }
 0x1cc   : > { %v738_v61 = vmax.f32 %v708_v58, 0.0  ;;  %v723_v62 = vadd.f32 %v1466_v60, %v1262_v18 }
 0x1cd   : > { %v717_v63 = vpop.f32.mrf.mxu1 }
 0x1ce   : > { %1493 = vmatprep.mubr.msk.f32.mxu1 %vm532_vm1, %v738_v61  ;;  %v718_v0 = vadd.f32 %v1262_v18, %v717_v63  ;;  %v741_v1 = vmax.f32 %v723_v62, 0.0 }
 0x1cf   : > { %1494 = vmatmul.mubr.msk.f32.gmra.mxu1 %vm532_vm1, %v739_v59 }
 0x1d0   : > { %v740_v2 = vmax.f32 %v718_v0, 0.0 }
 0x1d2   : > { %1496 = vmatprep.mubr.msk.f32.mxu1 %vm532_vm1, %v740_v2 }
 0x1d3   : > { %1497 = vmatmul.mubr.msk.f32.gmra.mxu1 %vm532_vm1, %v741_v1 }
 0x277   : > { %v1477_v4 = vpop.f32.mrf.mxu1 }
 0x278   : > { %v873_v5 = vadd.f32 %v1477_v4, %v1970_v3 }
 0x279   : > { %v867_v6 = vpop.f32.mrf.mxu1 }
 0x27a   : > { %v1297_v7 = vmul.f32 -1.442695, %v873_v5  ;;  %v868_v8 = vadd.f32 %v1970_v3, %v867_v6 }
 0x27b   : > { %v1480_v9 = vpop.f32.mrf.mxu1 }
 0x27c   : > { %1546 = vpow2.f32 %v1297_v7  ;;  %v1296_v10 = vmul.f32 -1.442695, %v868_v8  ;;  %v883_v11 = vadd.f32 %v1480_v9, %v1970_v3 }
 0x27d   : > { %v877_v12 = vpop.f32.mrf.mxu1 }
 0x27e   : > { %1548 = vpow2.f32 %v1296_v10  ;;  %v1299_v13 = vmul.f32 -1.442695, %v883_v11  ;;  %v878_v14 = vadd.f32 %v1970_v3, %v877_v12 }
 0x27f   : > { %v1483_v15 = vpop.f32.mrf.mxu1 }
 0x280   : > { %1550 = vpow2.f32 %v1299_v13  ;;  %v1298_v16 = vmul.f32 -1.442695, %v878_v14  ;;  %v893_v17 = vadd.f32 %v1483_v15, %v1970_v3 }
 0x281   : > { %v887_v18 = vpop.f32.mrf.mxu1 }
 0x282   : > { %1552 = vpow2.f32 %v1298_v16  ;;  %v1301_v19 = vmul.f32 -1.442695, %v893_v17  ;;  %v888_v20 = vadd.f32 %v1970_v3, %v887_v18 }
 0x283   : > { %v1486_v21 = vpop.f32.mrf.mxu1 }
 0x284   : > { %v1300_v22 = vmul.f32 -1.442695, %v888_v20  ;;  %1554 = vpow2.f32 %v1301_v19  ;;  %v903_v23 = vadd.f32 %v1486_v21, %v1970_v3 }
 0x285   : > { %v897_v24 = vpop.f32.mrf.mxu1 }
 0x286   : > { %1556 = vpow2.f32 %v1300_v22  ;;  %v898_v25 = vadd.f32 %v1970_v3, %v897_v24  ;;  %v1303_v29 = vmul.f32 -1.442695, %v903_v23 }
 0x287   : > { %v1489_v26 = vpop.f32.mrf.mxu1 }
 0x288   : > { %v1302_v27 = vmul.f32 -1.442695, %v898_v25  ;;  %v913_v38 = vadd.f32 %v1489_v26, %v1970_v3 }
 0x289   : > { %v1547_v28 = vpop.eup %1546  ;;  %v907_v30 = vpop.f32.mrf.mxu1 }
 0x28a   : > { %v995_v31 = vadd.f32 1.0, %v1547_v28  ;;  %1558 = vpow2.f32 %v1302_v27  ;;  %v908_v32 = vadd.f32 %v1970_v3, %v907_v30  ;;  %v1305_v44 = vmul.f32 -1.442695, %v913_v38 }
 0x28b   : > { %v1549_v33 = vpop.eup %1548  ;;  %v1492_v34 = vpop.f32.mrf.mxu1 }
 0x28c   : > { %1560 = vrcp.f32 %v995_v31  ;;  %v994_v35 = vadd.f32 1.0, %v1549_v33  ;;  %v1304_v36 = vmul.f32 -1.442695, %v908_v32  ;;  %v923_v48 = vadd.f32 %v1492_v34, %v1970_v3 }
 0x28d   : > { %v1551_v37 = vpop.eup %1550  ;;  %1562 = vpow2.f32 %v1303_v29  ;;  %v917_v39 = vpop.f32.mrf.mxu1 }
 0x28e   : > { %1564 = vrcp.f32 %v994_v35  ;;  %v997_v40 = vadd.f32 1.0, %v1551_v37  ;;  %v918_v43 = vadd.f32 %v1970_v3, %v917_v39  ;;  %v1307_v54 = vmul.f32 -1.442695, %v923_v48 }
 0x28f   : > { %v1553_v41 = vpop.eup %1552  ;;  %1566 = vpow2.f32 %v1304_v36  ;;  %v1495_v45 = vpop.f32.mrf.mxu1 }
 0x290   : > { %v996_v42 = vadd.f32 1.0, %v1553_v41  ;;  %1568 = vrcp.f32 %v997_v40  ;;  %v1306_v50 = vmul.f32 -1.442695, %v918_v43  ;;  %v933_v62 = vadd.f32 %v1495_v45, %v1970_v3 }
 0x291   : > { %v1555_v46 = vpop.eup %1554  ;;  %v927_v52 = vpop.f32.mrf.mxu1 }
 0x292   : > { %1570 = vrcp.f32 %v996_v42  ;;  %v999_v51 = vadd.f32 1.0, %v1555_v46  ;;  %v928_v56 = vadd.f32 %v1970_v3, %v927_v52  ;;  %v1309_v8 = vmul.f32 -1.442695, %v933_v62 }
 0x293   : > { %v1557_v47 = vpop.eup %1556  ;;  %1572 = vpow2.f32 %v1305_v44  ;;  %v1498_v58 = vpop.f32.mrf.mxu1 }
 0x294   : > { %v998_v49 = vadd.f32 1.0, %v1557_v47  ;;  %v1308_v63 = vmul.f32 -1.442695, %v928_v56  ;;  %v943_v14 = vadd.f32 %v1498_v58, %v1970_v3 }
 0x295   : > { %v937_v4 = vpop.f32.mrf.mxu1 }
 0x296   : > { %1574 = vrcp.f32 %v998_v49  ;;  %v938_v9 = vadd.f32 %v1970_v3, %v937_v4  ;;  %v1311_v20 = vmul.f32 -1.442695, %v943_v14 }
 0x297   : > { %v1559_v53 = vpop.eup %1558  ;;  %1576 = vpow2.f32 %v1306_v50 }
 0x298   : > { %v1000_v55 = vadd.f32 1.0, %v1559_v53  ;;  %1578 = vrcp.f32 %v999_v51  ;;  %v1310_v15 = vmul.f32 -1.442695, %v938_v9 }
 0x299   : > { %v1561_v57 = vpop.eup %1560  ;;  %1580 = vpow2.f32 %v1307_v54 }
 0x29a   : > { %v1563_v59 = vpop.eup %1562  ;;  %v1313_v60 = vmul.f32 -1.442695, %v1561_v57  ;;  %1582 = vrcp.f32 %v1000_v55 }
 0x29b   : > { %v1565_v61 = vpop.eup %1564  ;;  %v1001_v2 = vadd.f32 1.0, %v1563_v59 }
 0x29c   : > { %v1312_v0 = vmul.f32 -1.442695, %v1565_v61  ;;  %v1567_v1 = vpop.eup %1566  ;;  %1584 = vpow2.f32 %v1313_v60 }
 0x29d   : > { %v1569_v5 = vpop.eup %1568  ;;  %v1002_v10 = vadd.f32 1.0, %v1567_v1 }
 0x29e   : > { %1586 = vpow2.f32 %v1312_v0  ;;  %v1315_v12 = vmul.f32 -1.442695, %v1569_v5 }
 0x29f   : > { %v1571_v6 = vpop.eup %1570  ;;  %1588 = vpow2.f32 %v1308_v63 }
 0x2a0   : > { %v1314_v7 = vmul.f32 -1.442695, %v1571_v6  ;;  %1590 = vrcp.f32 %v1001_v2  ;;  %v1573_v11 = vpop.eup %1572 }
 0x2a1   : > { %v1003_v17 = vadd.f32 1.0, %v1573_v11 }
 0x2a2   : > { %1592 = vpow2.f32 %v1314_v7 }
 0x2a3   : > { %v1575_v13 = vpop.eup %1574  ;;  %1594 = vpow2.f32 %v1309_v8 }
 0x2a4   : > { %v1577_v16 = vpop.eup %1576  ;;  %1596 = vrcp.f32 %v1002_v10  ;;  %v1316_v19 = vmul.f32 -1.442695, %v1575_v13 }
 0x2a5   : > { %v1579_v18 = vpop.eup %1578  ;;  %1598 = vpow2.f32 %v1315_v12  ;;  %v1004_v22 = vadd.f32 1.0, %v1577_v16 }
 0x2a6   : > { %v1581_v21 = vpop.eup %1580  ;;  %1600 = vpow2.f32 %v1310_v15  ;;  %v1317_v24 = vmul.f32 -1.442695, %v1579_v18 }
 0x2a7   : > { %v1583_v23 = vpop.eup %1582  ;;  %1602 = vrcp.f32 %v1003_v17  ;;  %v1005_v3 = vadd.f32 1.0, %v1581_v21 }
 0x2a8   : > { %1604 = vpow2.f32 %v1316_v19  ;;  %v1318_v29 = vmul.f32 -1.442695, %v1583_v23 }
 0x2a9   : > { %v1585_v25 = vpop.eup %1584  ;;  %1606 = vpow2.f32 %v1311_v20 }
 0x2aa   : > { %1608 = vrcp.f32 %v1004_v22  ;;  %v1091_v31 = vadd.f32 1.0, %v1585_v25 }
 0x2ab   : > { %v1587_v26 = vpop.eup %1586  ;;  %1610 = vpow2.f32 %v1317_v24 }
 0x2ac   : > { %v1090_v27 = vadd.f32 1.0, %v1587_v26  ;;  %v1589_v28 = vpop.eup %1588 }
 0x2ad   : > { %v1591_v30 = vpop.eup %1590  ;;  %v1006_v33 = vadd.f32 1.0, %v1589_v28 }
 0x2ae   : > { %1612 = vrcp.f32 %v1090_v27  ;;  %v1319_v35 = vmul.f32 -1.442695, %v1591_v30 }
 0x2af   : > { %v1593_v32 = vpop.eup %1592  ;;  %1614 = vrcp.f32 %v1005_v3 }
 0x2b0   : > { %v1595_v34 = vpop.eup %1594  ;;  %1616 = vpow2.f32 %v1318_v29  ;;  %v1092_v37 = vadd.f32 1.0, %v1593_v32 }
 0x2b1   : > { %v1597_v36 = vpop.eup %1596  ;;  %1618 = vrcp.f32 %v1091_v31  ;;  %v1007_v39 = vadd.f32 1.0, %v1595_v34 }
 0x2b2   : > { %v1599_v38 = vpop.eup %1598  ;;  %1620 = vrcp.f32 %v1006_v33  ;;  %v1320_v41 = vmul.f32 -1.442695, %v1597_v36 }
 0x2b3   : > { %v1601_v40 = vpop.eup %1600  ;;  %1622 = vpow2.f32 %v1319_v35  ;;  %v1093_v43 = vadd.f32 1.0, %v1599_v38 }
 0x2b4   : > { %v1603_v42 = vpop.eup %1602  ;;  %1624 = vrcp.f32 %v1092_v37  ;;  %v1008_v46 = vadd.f32 1.0, %v1601_v40 }
 0x2b5   : > { %v1605_v44 = vpop.eup %1604  ;;  %1626 = vrcp.f32 %v1007_v39  ;;  %v1321_v48 = vmul.f32 -1.442695, %v1603_v42 }
 0x2b6   : > { %v1607_v45 = vpop.eup %1606  ;;  %1628 = vpow2.f32 %v1320_v41  ;;  %v1094_v50 = vadd.f32 1.0, %v1605_v44 }
 0x2b7   : > { %v1609_v47 = vpop.eup %1608  ;;  %1630 = vrcp.f32 %v1093_v43  ;;  %v1009_v52 = vadd.f32 1.0, %v1607_v45 }
 0x2b8   : > { %v1611_v49 = vpop.eup %1610  ;;  %1632 = vrcp.f32 %v1008_v46  ;;  %v1322_v54 = vmul.f32 -1.442695, %v1609_v47 }
 0x2b9   : > { %1634 = vpow2.f32 %v1321_v48  ;;  %v1095_v56 = vadd.f32 1.0, %v1611_v49 }
 0x2ba   : > { %1636 = vrcp.f32 %v1094_v50 }
 0x2bb   : > { %v1613_v51 = vpop.eup %1612  ;;  %1638 = vrcp.f32 %v1009_v52 }
 0x2bc   : > { %1138 = vxpose.xlu0.b32.start [1/16] (narrow) %v1613_v51, 8  ;;  %v1615_v53 = vpop.eup %1614  ;;  %1640 = vpow2.f32 %v1322_v54 }
 0x2bd   : > { %v1617_v55 = vpop.eup %1616  ;;  %v1323_v59 = vmul.f32 -1.442695, %v1615_v53  ;;  %1642 = vrcp.f32 %v1095_v56 }
 0x2be   : > { %v1619_v57 = vpop.eup %1618  ;;  %v1096_v61 = vadd.f32 1.0, %v1617_v55 }
 0x2bf   : > { %v1621_v58 = vpop.eup %1620  ;;  %1644 = vpow2.f32 %v1323_v59 }
 0x2c0   : > { %1139 = vxpose.xlu0.b32.cont [2/16] (narrow) %v1619_v57, 8  ;;  %v1623_v60 = vpop.eup %1622  ;;  %v1324_v0 = vmul.f32 -1.442695, %v1621_v58  ;;  %1646 = vrcp.f32 %v1096_v61 }
 0x2c1   : > { %v1625_v62 = vpop.eup %1624  ;;  %v1097_v2 = vadd.f32 1.0, %v1623_v60 }
 0x2c2   : > { %v1627_v63 = vpop.eup %1626  ;;  %1648 = vpow2.f32 %v1324_v0 }
 0x2c3   : > { %v1629_v1 = vpop.eup %1628  ;;  %v1325_v6 = vmul.f32 -1.442695, %v1627_v63  ;;  %1650 = vrcp.f32 %v1097_v2 }
 0x2c4   : > { %1140 = vxpose.xlu0.b32.cont [3/16] (narrow) %v1625_v62, 8  ;;  %v1631_v4 = vpop.eup %1630  ;;  %v1098_v8 = vadd.f32 1.0, %v1629_v1 }
 0x2c5   : > { %v1633_v5 = vpop.eup %1632  ;;  %1652 = vpow2.f32 %v1325_v6 }
 0x2c6   : > { %v1635_v7 = vpop.eup %1634  ;;  %v1326_v11 = vmul.f32 -1.442695, %v1633_v5  ;;  %1654 = vrcp.f32 %v1098_v8 }
 0x2c7   : > { %v1637_v9 = vpop.eup %1636  ;;  %v1099_v13 = vadd.f32 1.0, %v1635_v7 }
 0x2c8   : > { %1141 = vxpose.xlu0.b32.cont [4/16] (narrow) %v1631_v4, 8  ;;  %v1639_v10 = vpop.eup %1638  ;;  %1656 = vpow2.f32 %v1326_v11 }
 0x2c9   : > { %v1641_v12 = vpop.eup %1640  ;;  %v1327_v15 = vmul.f32 -1.442695, %v1639_v10  ;;  %1658 = vrcp.f32 %v1099_v13 }
 0x2ca   : > { %v1643_v14 = vpop.eup %1642  ;;  %v1100_v17 = vadd.f32 1.0, %v1641_v12 }
 0x2cb   : > { %1660 = vpow2.f32 %v1327_v15 }
 0x2cc   : > { %1142 = vxpose.xlu0.b32.cont [5/16] (narrow) %v1637_v9, 8  ;;  %v1645_v16 = vpop.eup %1644  ;;  %1662 = vrcp.f32 %v1100_v17 }
 0x2cd   : > { %v1647_v18 = vpop.eup %1646  ;;  %v1101_v20 = vadd.f32 1.0, %v1645_v16 }
 0x2cf   : > { %v1649_v19 = vpop.eup %1648  ;;  %1664 = vrcp.f32 %v1101_v20 }
 0x2d0   : > { %1143 = vxpose.xlu0.b32.cont [6/16] (narrow) %v1643_v14, 8  ;;  %v1651_v21 = vpop.eup %1650  ;;  %v1102_v23 = vadd.f32 1.0, %v1649_v19 }
 0x2d2   : > { %v1653_v22 = vpop.eup %1652  ;;  %1666 = vrcp.f32 %v1102_v23 }
 0x2d3   : > { %v1655_v24 = vpop.eup %1654  ;;  %v1103_v26 = vadd.f32 1.0, %v1653_v22 }
 0x2d4   : > { %1144 = vxpose.xlu0.b32.cont [7/16] (narrow) %v1647_v18, 8 }
 0x2d5   : > { %v1657_v25 = vpop.eup %1656  ;;  %1668 = vrcp.f32 %v1103_v26 }
 0x2d6   : > { %v1659_v3 = vpop.eup %1658  ;;  %v1104_v28 = vadd.f32 1.0, %v1657_v25 }
 0x2d8   : > { %1145 = vxpose.xlu0.b32.cont [8/16] (narrow) %v1651_v21, 8  ;;  %v1661_v27 = vpop.eup %1660  ;;  %1670 = vrcp.f32 %v1104_v28 }
 0x2d9   : > { %v1663_v29 = vpop.eup %1662  ;;  %v1105_v30 = vadd.f32 1.0, %v1661_v27 }
 0x2db   : > { %1672 = vrcp.f32 %v1105_v30 }
 0x2dc   : > { %1146 = vxpose.xlu0.b32.cont [9/16] (narrow) %v1655_v24, 8  ;;  %v1665_v31 = vpop.eup %1664 }
 0x2df   : > { %v1667_v32 = vpop.eup %1666 }
 0x2e0   : > { %1147 = vxpose.xlu0.b32.cont [10/16] (narrow) %v1659_v3, 8 }
 0x2e2   : > { %v1669_v33 = vpop.eup %1668 }
 0x2e4   : > { %1148 = vxpose.xlu0.b32.cont [11/16] (narrow) %v1663_v29, 8 }
 0x2e5   : > { %v1671_v34 = vpop.eup %1670 }
 0x2e8   : > { %1149 = vxpose.xlu0.b32.cont [12/16] (narrow) %v1665_v31, 8  ;;  %v1673_v35 = vpop.eup %1672 }
 0x2ec   : > { %1150 = vxpose.xlu0.b32.cont [13/16] (narrow) %v1667_v32, 8 }
 0x2f0   : > { %1151 = vxpose.xlu0.b32.cont [14/16] (narrow) %v1669_v33, 8 }
 0x2f4   : > { %1152 = vxpose.xlu0.b32.cont [15/16] (narrow) %v1671_v34, 8 }
 0x2f8   : > { %1153 = vxpose.xlu0.b32.end [16/16] (narrow) %v1673_v35, 8 }
 0x338   : > { %v1154_v36 = vpop.trf.xlu0 }
 0x339   : > { %1170 = vst [vmem:[%s273_s30] sm:$0x1] %v1154_v36 }
 0x33a   : > { %1687 = shalt.err (!%p1684_p3)
}
 0x33b   : > { %s1688_s22 = scalar_lea.hbm %s1182_s15, 16  ;;  %s1692_s24 = scalar_lea.hbm %s2035_s7, 32 }
 0x33c   : > { %p1689_p4 = scmp.ne.s32.totalorder %s1182_s15, %s1688_s22  ;;  %p1693_p9 = scmp.lt.s32.totalorder %s1182_s15, %s2035_s7 }
 0x33d   : > { %p1694_p10 = scmp.lt.s32.totalorder %s1692_s24, %s1688_s22 }
 0x33e   : > { %p1690_p7 = pnand %p1689_p4, %p1815_p5 }
 0x33f   : > { %p1695_p11 = por %p1694_p10, %p1693_p9 }
 0x340   : > { %p1691_p8 = pneg %p1690_p7 }
 0x342   : > { %p1696_p12 = pnand %p1695_p11, %p1691_p8 }
 0x344   : > { %1699 = shalt.err (!%p1696_p12)
}
 0x345   : > { %1507 = dma.vmem_to_hbm [thread:$0]  (%p1815_p5), %s1989_s9, 16, %s1182_s15, %s1172_s16  }
 0x346 PF: > { %p1513_p13 = scmp.ge.s32.totalorder %s1734_s29, 2  ;;  %s1196_s30 = sand.u32 1, %s1722_s26  }
 0x347   : > { %s1197_s10 = scalar_lea.sflag [#allocation4], %s1196_s30 }
 0x348   : > { %p1510_p0 = pnand %p1513_p13, %p1819_p6 }
 0x34a   : > { %p1511_p1 = pneg %p1510_p0 }
 0x34c   : > { %1717 = dma.done.wait (%p1511_p1), %s1197_s10, 16  }
 0x34d   : > { %1719 = vsyncadd (%p1511_p1), %s1197_s10, 4294967280  ;;  %p19_p2 = scmp.ge.s32.totalorder %s1803_s8, 4   ;;  %s2038_s26 = smov %s1726_s27 }
 0x34e   : > { %s2039_s27 = smov %s1730_s28  ;;  %s2040_s28 = smov %s1813_s11 }
 0x34f   : > { %s2041_s29 = smov %s1803_s8  ;;  %21 = sbr.rel (!%p19_p2) target bundleno = 6 (0x6), region = 83 }
 0x354   :  { %1201 = vsyncpa [#allocation4], 1 }
 0x355   :  { %1203 = vsyncpa [#allocation4 + $0x1], 1 }

</bundles_post_ra>
